<compile_context>
chip_gen: v5e
topology: v5e:2x2
jax: 0.10.0
libtpu: 0.0.40
codegen_flags: <defaults>
</compile_context>

<pallas_src>
import functools
import math

import jax
import jax.numpy as jnp
from jax.experimental import pallas as pl
from jax.experimental.pallas import tpu as pltpu


NEG_INF = -1e30


def _compute_vmem_limit():
    cap = 64 * 1024 * 1024
    try:
        info = pltpu.get_tpu_info()
        cap = int(getattr(info, "vmem_capacity_bytes", cap))
    except Exception:
        pass
    # ~75% of physical: ~96 MiB on 128 MiB parts (v5e/v6e), ~48 MiB on v7x.
    return max(32 * 1024 * 1024, min(cap * 3 // 4, 100 * 1024 * 1024))


VMEM_LIMIT = _compute_vmem_limit()

# Preferred tiles (all (8,128)-aligned; clamped / adjusted per shape below).
TILE_M = 512
TILE_N = 512
TILE_K = 512
TILE_M_HEAD = 1024   # LM head: activation tiny vs. (H, V) weight -> tall M tiles
TILE_Q = 256
TILE_KV = 256


def _round_up(x, m):
    return (x + m - 1) // m * m


def _fit_tile(dim, pref, align):
    """Tile <= ~pref that is `align`-aligned; divides dim when possible
    (otherwise the caller zero-pads dim up to a multiple of the tile)."""
    if dim <= pref:
        return dim if dim % align == 0 else _round_up(dim, align)
    t = (pref // align) * align
    while t >= align:
        if dim % t == 0:
            return t
        t -= align
    return (pref // align) * align


def _pick_seq_tile(S, pref):
    if S <= pref:
        return S
    t = (pref // 8) * 8
    while t >= 8:
        if S % t == 0:
            return t
        t -= 8
    return S


def _pad2d(a, rows, cols):
    R, C = a.shape
    if R == rows and C == cols:
        return a
    return jnp.pad(a, ((0, rows - R), (0, cols - C)))


def _gelu_tanh(x):
    # Megatron-style fused bias-gelu uses the tanh approximation.
    c = math.sqrt(2.0 / math.pi)
    return 0.5 * x * (1.0 + jnp.tanh(c * (x + 0.044715 * x * x * x)))


# ------------------------------ LayerNorm kernel ------------------------------

def layernorm_kernel(x_ref, g_ref, b_ref, o_ref, *, eps):
    x = x_ref[...].astype(jnp.float32)
    mu = jnp.mean(x, axis=-1, keepdims=True)
    var = jnp.mean(jnp.square(x - mu), axis=-1, keepdims=True)
    y = (x - mu) * jax.lax.rsqrt(var + eps)
    y = y * g_ref[...].astype(jnp.float32) + b_ref[...].astype(jnp.float32)
    o_ref[...] = y.astype(o_ref.dtype)


def layernorm(x, gamma, beta, eps, out_dtype=jnp.bfloat16, tm=TILE_M):
    M, H = x.shape
    tm = _fit_tile(M, tm, 8)
    Mp = _round_up(M, tm)
    xp = x if Mp == M else jnp.pad(x, ((0, Mp - M), (0, 0)))
    out = pl.pallas_call(
        functools.partial(layernorm_kernel, eps=eps),
        grid=(Mp // tm,),
        in_specs=[pl.BlockSpec((tm, H), lambda i: (i, 0)),
                  pl.BlockSpec((1, H), lambda i: (0, 0)),
                  pl.BlockSpec((1, H), lambda i: (0, 0))],
        out_specs=pl.BlockSpec((tm, H), lambda i: (i, 0)),
        out_shape=jax.ShapeDtypeStruct((Mp, H), out_dtype),
        compiler_params=pltpu.CompilerParams(
            dimension_semantics=("parallel",),
            vmem_limit_bytes=VMEM_LIMIT),
    )(xp, gamma, beta)
    return out[:M] if Mp != M else out


# --------------------- tiled matmul (+bias/+gelu/+residual) -------------------

def matmul_kernel(*refs, has_bias, has_residual, apply_gelu, acc_in_out):
    x_ref, w_ref = refs[0], refs[1]
    idx = 2
    b_ref = r_ref = None
    if has_bias:
        b_ref = refs[idx]; idx += 1
    if has_residual:
        r_ref = refs[idx]; idx += 1
    o_ref = refs[idx]
    # fp32 outputs accumulate directly in the resident output block (no scratch).
    acc_ref = o_ref if acc_in_out else refs[idx + 1]

    kk = pl.program_id(2)

    @pl.when(kk == 0)
    def _():
        acc_ref[...] = jnp.zeros_like(acc_ref)

    acc_ref[...] += jnp.dot(x_ref[...], w_ref[...],
                            preferred_element_type=jnp.float32)

    needs_epilogue = has_bias or has_residual or apply_gelu
    if needs_epilogue or not acc_in_out:
        @pl.when(kk == pl.num_programs(2) - 1)
        def _():
            y = acc_ref[...]
            if has_bias:
                y = y + b_ref[...].astype(jnp.float32)
            if apply_gelu:
                y = _gelu_tanh(y)
            if has_residual:
                y = y + r_ref[...].astype(jnp.float32)
            o_ref[...] = y.astype(o_ref.dtype)


def matmul(x, w, bias=None, residual=None, apply_gelu=False,
           out_dtype=jnp.float32, tm=TILE_M, tn=TILE_N, tk=TILE_K):
    """y = [residual +] [gelu](x @ w [+ bias]), tiled over (M, N, K)."""
    M, K = x.shape
    K2, N = w.shape
    assert K == K2
    tm = _fit_tile(M, tm, 8)
    tn = _fit_tile(N, tn, 128)
    tk = _fit_tile(K, tk, 128)
    Mp, Np, Kp = _round_up(M, tm), _round_up(N, tn), _round_up(K, tk)

    args = [_pad2d(x, Mp, Kp), _pad2d(w, Kp, Np)]
    in_specs = [pl.BlockSpec((tm, tk), lambda i, j, k: (i, k)),
                pl.BlockSpec((tk, tn), lambda i, j, k: (k, j))]
    if bias is not None:
        args.append(_pad2d(bias, 1, Np))
        in_specs.append(pl.BlockSpec((1, tn), lambda i, j, k: (0, j)))
    if residual is not None:
        args.append(_pad2d(residual, Mp, Np))
        in_specs.append(pl.BlockSpec((tm, tn), lambda i, j, k: (i, j)))

    acc_in_out = (out_dtype == jnp.float32)
    kernel = functools.partial(matmul_kernel,
                               has_bias=bias is not None,
                               has_residual=residual is not None,
                               apply_gelu=apply_gelu,
                               acc_in_out=acc_in_out)
    out = pl.pallas_call(
        kernel,
        grid=(Mp // tm, Np // tn, Kp // tk),
        in_specs=in_specs,
        out_specs=pl.BlockSpec((tm, tn), lambda i, j, k: (i, j)),
        out_shape=jax.ShapeDtypeStruct((Mp, Np), out_dtype),
        scratch_shapes=[] if acc_in_out else [pltpu.VMEM((tm, tn), jnp.float32)],
        compiler_params=pltpu.CompilerParams(
            dimension_semantics=("parallel", "parallel", "arbitrary"),
            vmem_limit_bytes=VMEM_LIMIT),
    )(*args)
    if (Mp, Np) != (M, N):
        out = out[:M, :N]
    return out


# ------------------------ flash-style causal attention ------------------------

def flash_attn_kernel(q_ref, k_ref, v_ref, o_ref, m_sc, l_sc, acc_sc,
                      *, sm_scale, tq, tk):
    qi = pl.program_id(2)
    ki = pl.program_id(3)

    @pl.when(ki == 0)
    def _():
        m_sc[...] = jnp.full_like(m_sc, NEG_INF)
        l_sc[...] = jnp.zeros_like(l_sc)
        acc_sc[...] = jnp.zeros_like(acc_sc)

    q_start = qi * tq
    k_start = ki * tk

    # KV tiles fully above the causal diagonal: no compute (and no DMA either,
    # since the K/V index_maps clamp to the last needed block).
    @pl.when(k_start < q_start + tq)
    def _():
        q = q_ref[0]                                   # (tq, hd) bf16
        k = k_ref[0]                                   # (tk, hd) bf16
        v = v_ref[0]                                   # (tk, hd) bf16
        s = jax.lax.dot_general(q, k, (((1,), (1,)), ((), ())),
                                preferred_element_type=jnp.float32) * sm_scale
        row = q_start + jax.lax.broadcasted_iota(jnp.int32, (tq, tk), 0)
        col = k_start + jax.lax.broadcasted_iota(jnp.int32, (tq, tk), 1)
        s = jnp.where(row >= col, s, NEG_INF)

        m_prev = m_sc[...]
        m_new = jnp.maximum(m_prev, jnp.max(s, axis=-1, keepdims=True))
        alpha = jnp.exp(m_prev - m_new)
        p = jnp.exp(s - m_new)
        l_sc[...] = alpha * l_sc[...] + jnp.sum(p, axis=-1, keepdims=True)
        acc_sc[...] = alpha * acc_sc[...] + jnp.dot(
            p.astype(v.dtype), v, preferred_element_type=jnp.float32)
        m_sc[...] = m_new

    @pl.when(ki == pl.num_programs(3) - 1)
    def _():
        inv_l = pl.reciprocal(l_sc[...], approx=True)
        o_ref[0] = (acc_sc[...] * inv_l).astype(o_ref.dtype)


def _attn_compiler_params():
    return pltpu.CompilerParams(
        dimension_semantics=("parallel", "parallel", "parallel", "arbitrary"),
        vmem_limit_bytes=VMEM_LIMIT)


def flash_attention_fused(qkv, num_heads, head_dim, sm_scale,
                          tq=TILE_Q, tkv=TILE_KV):
    """qkv: (B, S, 3H) bf16 in [Q_all|K_all|V_all] layout -> (B, S, H) bf16.

    Per-head column BlockSpecs: no head split/merge transposes, and the output
    lands directly in the (B, S, H) row layout consumed by the w_o matmul.
    """
    B, S, threeH = qkv.shape
    H = threeH // 3
    tq = _pick_seq_tile(S, tq)
    tkv = _pick_seq_tile(S, tkv)
    nq, nk = S // tq, S // tkv

    def last_kv(qi):                       # last KV block needed for this Q tile
        return ((qi + 1) * tq - 1) // tkv

    q_map = lambda b, h, qi, ki: (b, qi, h)
    k_map = lambda b, h, qi, ki: (b, jnp.minimum(ki, last_kv(qi)), num_heads + h)
    v_map = lambda b, h, qi, ki: (b, jnp.minimum(ki, last_kv(qi)), 2 * num_heads + h)

    kernel = functools.partial(flash_attn_kernel, sm_scale=sm_scale, tq=tq, tk=tkv)
    return pl.pallas_call(
        kernel,
        grid=(B, num_heads, nq, nk),
        in_specs=[pl.BlockSpec((1, tq, head_dim), q_map),
                  pl.BlockSpec((1, tkv, head_dim), k_map),
                  pl.BlockSpec((1, tkv, head_dim), v_map)],
        out_specs=pl.BlockSpec((1, tq, head_dim), lambda b, h, qi, ki: (b, qi, h)),
        out_shape=jax.ShapeDtypeStruct((B, S, H), jnp.bfloat16),
        scratch_shapes=[pltpu.VMEM((tq, 1), jnp.float32),
                        pltpu.VMEM((tq, 1), jnp.float32),
                        pltpu.VMEM((tq, head_dim), jnp.float32)],
        compiler_params=_attn_compiler_params(),
    )(qkv, qkv, qkv)


def flash_attention_bhd(q, k, v, sm_scale, tq=TILE_Q, tkv=TILE_KV):
    """Fallback path for head_dim not a multiple of 128: (B*heads, S, hd)."""
    BH, S, hd = q.shape
    tq = _pick_seq_tile(S, tq)
    tkv = _pick_seq_tile(S, tkv)
    nq, nk = S // tq, S // tkv

    def last_kv(qi):
        return ((qi + 1) * tq - 1) // tkv

    kernel = functools.partial(flash_attn_kernel, sm_scale=sm_scale, tq=tq, tk=tkv)
    return pl.pallas_call(
        kernel,
        grid=(BH, 1, nq, nk),
        in_specs=[pl.BlockSpec((1, tq, hd), lambda b, h, qi, ki: (b, qi, 0)),
                  pl.BlockSpec((1, tkv, hd),
                               lambda b, h, qi, ki: (b, jnp.minimum(ki, last_kv(qi)), 0)),
                  pl.BlockSpec((1, tkv, hd),
                               lambda b, h, qi, ki: (b, jnp.minimum(ki, last_kv(qi)), 0))],
        out_specs=pl.BlockSpec((1, tq, hd), lambda b, h, qi, ki: (b, qi, 0)),
        out_shape=jax.ShapeDtypeStruct((BH, S, hd), jnp.bfloat16),
        scratch_shapes=[pltpu.VMEM((tq, 1), jnp.float32),
                        pltpu.VMEM((tq, 1), jnp.float32),
                        pltpu.VMEM((tq, hd), jnp.float32)],
        compiler_params=_attn_compiler_params(),
    )(q, k, v)


def causal_attention(qkv2d, B, S, H, num_heads):
    """qkv2d: (B*S, 3H) bf16 -> (B*S, H) bf16 causal self-attention output."""
    head_dim = H // num_heads
    sm_scale = 1.0 / math.sqrt(head_dim)
    if head_dim % 128 == 0:
        ctx = flash_attention_fused(qkv2d.reshape(B, S, 3 * H), num_heads,
                                    head_dim, sm_scale)
        return ctx.reshape(B * S, H)
    # TODO(synk): head_dim not lane-aligned -> fall back to XLA head transposes.
    q, k, v = jnp.split(qkv2d, 3, axis=-1)

    def to_heads(t):
        return (t.reshape(B, S, num_heads, head_dim)
                 .transpose(0, 2, 1, 3)
                 .reshape(B * num_heads, S, head_dim))

    ctx = flash_attention_bhd(to_heads(q), to_heads(k), to_heads(v), sm_scale)
    return (ctx.reshape(B, num_heads, S, head_dim)
               .transpose(0, 2, 1, 3)
               .reshape(B * S, H))


# --------------------------- one transformer block -----------------------------

def run_gpt_block(x2d, lp, B, S, num_heads, eps):
    """One FusedGPTTransformerLayer1D (pre-LN).  x2d: fp32 (B*S, H)."""
    H = x2d.shape[1]

    # ---- self-attention ----
    h_ln = layernorm(x2d, lp['ln1_g'], lp['ln1_b'], eps, out_dtype=jnp.bfloat16)
    qkv = matmul(h_ln, lp['w_qkv'], bias=lp['b_qkv'], out_dtype=jnp.bfloat16)  # (BS, 3H)
    ctx2d = causal_attention(qkv, B, S, H, num_heads)
    # TODO(synk): optional LN-into-matmul-finalize fusion (tn=H) skipped; kept
    # as a separate layernorm kernel for clarity / v7x VMEM headroom.
    x2d = matmul(ctx2d, lp['w_o'], bias=lp['b_o'], residual=x2d,
                 out_dtype=jnp.float32)               # residual add (drop rate 0)

    # ---- MLP ----
    h_ln2 = layernorm(x2d, lp['ln2_g'], lp['ln2_b'], eps, out_dtype=jnp.bfloat16)
    m = matmul(h_ln2, lp['w_fc1'], bias=lp['b_fc1'], apply_gelu=True,
               out_dtype=jnp.bfloat16)
    x2d = matmul(m, lp['w_fc2'], bias=lp['b_fc2'], residual=x2d,
                 out_dtype=jnp.float32)               # residual add (drop rate 0)
    return x2d


# ------------------------------ parameters ------------------------------------

def init_params(key, *, num_layers, hidden, vocab, max_pos, mlp_ratio):
    inner = int(mlp_ratio * hidden)
    std = 0.02
    keys = jax.random.split(key, 3 + num_layers)

    def w(k, shape):
        return (jax.random.normal(k, shape, jnp.float32) * std).astype(jnp.bfloat16)

    params = {
        # VocabParallelEmbedding (first=True): word + position embeddings.
        'wte': jax.random.normal(keys[0], (vocab, hidden), jnp.float32) * std,
        'wpe': jax.random.normal(keys[1], (max_pos, hidden), jnp.float32) * std,
        # last=True: final LayerNorm + VocabParallelGPTLMHead1D (no bias).
        'ln_f_g': jnp.ones((1, hidden), jnp.float32),
        'ln_f_b': jnp.zeros((1, hidden), jnp.float32),
        # Head weight stored ONCE as (H, V) bf16 (no per-call transpose).
        'w_head': w(keys[2], (hidden, vocab)),
        'layers': [],
    }
    for li in range(num_layers):
        lk = jax.random.split(keys[3 + li], 4)
        params['layers'].append({
            'ln1_g': jnp.ones((1, hidden), jnp.float32),
            'ln1_b': jnp.zeros((1, hidden), jnp.float32),
            # Contiguous [Q_all | K_all | V_all] column layout (a titans
            # per-head-interleaved checkpoint needs a one-time host permutation).
            'w_qkv': w(lk[0], (hidden, 3 * hidden)),
            'b_qkv': jnp.zeros((1, 3 * hidden), jnp.float32),
            'w_o': w(lk[1], (hidden, hidden)),
            'b_o': jnp.zeros((1, hidden), jnp.float32),
            'ln2_g': jnp.ones((1, hidden), jnp.float32),
            'ln2_b': jnp.zeros((1, hidden), jnp.float32),
            'w_fc1': w(lk[2], (hidden, inner)),
            'b_fc1': jnp.zeros((1, inner), jnp.float32),
            'w_fc2': w(lk[3], (inner, hidden)),
            'b_fc2': jnp.zeros((1, hidden), jnp.float32),
        })
    return params


# ------------------------------ forward pass ----------------------------------

def fused_pipeline_gpt1d(params, input_ids, attention_mask, *, num_heads, eps=1e-5):
    vocab, hidden = params['wte'].shape[0], params['wte'].shape[1]
    B, S = input_ids.shape

    # Embedding stage (first=True): token + position embedding (dropout 0.0).
    # TODO(synk): the embedding gather stays an XLA gather (glue, not a hot matmul).
    pos_ids = jnp.arange(S)
    h = params['wte'][input_ids] + params['wpe'][pos_ids][None, :, :]
    h2d = h.astype(jnp.float32).reshape(B * S, hidden)

    # FusedPipelineGPT1D.forward only casts the mask to the hidden dtype; the
    # fused causal ScaleMaskSoftmax inside the blocks applies causal masking and
    # ignores the padding mask, so it is carried through unchanged here.
    attention_mask = attention_mask.astype(h2d.dtype)
    del attention_mask

    for lp in params['layers']:
        h2d = run_gpt_block(h2d, lp, B, S, num_heads, eps)

    # last=True: final LayerNorm + LM head projection to vocab (no bias).
    hn = layernorm(h2d, params['ln_f_g'], params['ln_f_b'], eps,
                   out_dtype=jnp.bfloat16)
    logits2d = matmul(hn, params['w_head'], out_dtype=jnp.float32,
                      tm=TILE_M_HEAD)
    return logits2d.reshape(B, S, vocab)


# ---------------------------------- main ---------------------------------------

if __name__ == "__main__":
    # Small but lane-aligned config: head_dim = 256 / 2 = 128 so the fused
    # (transpose-free) attention path is exercised.
    B, S = 2, 8
    hidden, num_heads, num_layers = 256, 2, 2
    vocab, max_pos = 128, 64

    key = jax.random.PRNGKey(0)
    pkey, ikey = jax.random.split(key)
    params = init_params(pkey, num_layers=num_layers, hidden=hidden,
                         vocab=vocab, max_pos=max_pos, mlp_ratio=4.0)

    input_ids = jax.random.randint(ikey, (B, S), 0, vocab)
    attention_mask = jnp.ones((B, S), jnp.float32)

    out = fused_pipeline_gpt1d(params, input_ids, attention_mask, num_heads=num_heads)
    out = jax.block_until_ready(out)

    assert out.shape == (B, S, vocab), out.shape
    assert bool(jnp.all(jnp.isfinite(out)))
    print("KERNEL_OK")
</pallas_src>

<mosaic_0001>
module attributes {stable_mosaic.version = 11 : i64} {
  func.func @layernorm_kernel(%arg0: i32, %arg1: memref<16x256xf32, #tpu.memory_space<vmem>>, %arg2: memref<1x256xf32, #tpu.memory_space<vmem>>, %arg3: memref<1x256xf32, #tpu.memory_space<vmem>>, %arg4: memref<16x256xbf16, #tpu.memory_space<vmem>>) attributes {dimension_semantics = [#tpu.dimension_semantics<parallel>], iteration_bounds = array<i64: 1>, scalar_prefetch = 0 : i64, scratch_operands = 0 : i64, tpu.core_type = #tpu.core_type<tc>, window_params = [{transform_indices = @transform_0, window_bounds = array<i64: 16, 256>}, {pipeline_mode = #tpu.pipeline_mode<synchronous>, transform_indices = @transform_1, window_bounds = array<i64: 1, 256>}, {pipeline_mode = #tpu.pipeline_mode<synchronous>, transform_indices = @transform_2, window_bounds = array<i64: 1, 256>}, {transform_indices = @transform_3, window_bounds = array<i64: 16, 256>}]} {
    %c0 = arith.constant 0 : index
    %c0_0 = arith.constant 0 : index
    %0 = vector.load %arg1[%c0, %c0_0] : memref<16x256xf32, #tpu.memory_space<vmem>>, vector<16x256xf32>
    %cst = arith.constant dense<0.000000e+00> : vector<16xf32>
    %1 = vector.multi_reduction <add>, %0, %cst [1] : vector<16x256xf32> to vector<16xf32>
    %2 = vector.shape_cast %1 : vector<16xf32> to vector<16x1xf32>
    %cst_1 = arith.constant 2.560000e+02 : f32
    %3 = vector.broadcast %cst_1 : f32 to vector<16x1xf32>
    %4 = arith.divf %2, %3 : vector<16x1xf32>
    %5 = vector.broadcast %4 : vector<16x1xf32> to vector<16x256xf32>
    %6 = arith.subf %0, %5 : vector<16x256xf32>
    %7 = arith.mulf %6, %6 : vector<16x256xf32>
    %cst_2 = arith.constant dense<0.000000e+00> : vector<16xf32>
    %8 = vector.multi_reduction <add>, %7, %cst_2 [1] : vector<16x256xf32> to vector<16xf32>
    %9 = vector.shape_cast %8 : vector<16xf32> to vector<16x1xf32>
    %cst_3 = arith.constant 2.560000e+02 : f32
    %10 = vector.broadcast %cst_3 : f32 to vector<16x1xf32>
    %11 = arith.divf %9, %10 : vector<16x1xf32>
    %12 = vector.broadcast %4 : vector<16x1xf32> to vector<16x256xf32>
    %13 = arith.subf %0, %12 : vector<16x256xf32>
    %cst_4 = arith.constant 9.99999974E-6 : f32
    %14 = vector.broadcast %cst_4 : f32 to vector<16x1xf32>
    %15 = arith.addf %11, %14 : vector<16x1xf32>
    %16 = math.rsqrt %15 : vector<16x1xf32>
    %17 = vector.broadcast %16 : vector<16x1xf32> to vector<16x256xf32>
    %18 = arith.mulf %13, %17 : vector<16x256xf32>
    %c0_5 = arith.constant 0 : index
    %c0_6 = arith.constant 0 : index
    %19 = vector.load %arg2[%c0_5, %c0_6] : memref<1x256xf32, #tpu.memory_space<vmem>>, vector<1x256xf32>
    %20 = vector.broadcast %19 : vector<1x256xf32> to vector<16x256xf32>
    %21 = arith.mulf %18, %20 : vector<16x256xf32>
    %c0_7 = arith.constant 0 : index
    %c0_8 = arith.constant 0 : index
    %22 = vector.load %arg3[%c0_7, %c0_8] : memref<1x256xf32, #tpu.memory_space<vmem>>, vector<1x256xf32>
    %23 = vector.broadcast %22 : vector<1x256xf32> to vector<16x256xf32>
    %24 = arith.addf %21, %23 : vector<16x256xf32>
    %25 = arith.truncf %24 : vector<16x256xf32> to vector<16x256xbf16>
    %c0_9 = arith.constant 0 : index
    %c0_10 = arith.constant 0 : index
    %26 = vector.load %arg4[%c0_9, %c0_10] : memref<16x256xbf16, #tpu.memory_space<vmem>>, vector<16x256xbf16>
    tpu.vector_store %arg4[%c0_9, %c0_10], %25 {strides = array<i32>} : memref<16x256xbf16, #tpu.memory_space<vmem>>, vector<16x256xbf16>,
    return
  }
  func.func @transform_0(%arg0: i32) -> (i32, i32) {
    %c0_i32 = arith.constant 0 : i32
    %c0_i32_0 = arith.constant 0 : i32
    return %arg0, %c0_i32 : i32, i32
  }
  func.func @transform_1(%arg0: i32) -> (i32, i32) {
    %c0_i32 = arith.constant 0 : i32
    %c0_i32_0 = arith.constant 0 : i32
    %c0_i32_1 = arith.constant 0 : i32
    return %c0_i32, %c0_i32_0 : i32, i32
  }
  func.func @transform_2(%arg0: i32) -> (i32, i32) {
    %c0_i32 = arith.constant 0 : i32
    %c0_i32_0 = arith.constant 0 : i32
    %c0_i32_1 = arith.constant 0 : i32
    return %c0_i32, %c0_i32_0 : i32, i32
  }
  func.func @transform_3(%arg0: i32) -> (i32, i32) {
    %c0_i32 = arith.constant 0 : i32
    %c0_i32_0 = arith.constant 0 : i32
    return %arg0, %c0_i32 : i32, i32
  }
}

</mosaic_0001>

<bundles_post_ra>
// kernel: tpu_custom_call.1
= control target key start
LH: loop header
LB: loop body
LE: loop exit
PB: predicated region body
PF: predicated region fallthrough
CT: control target
= control target key end

     0   :  { %8 = vsyncpa [#allocation3], 0  ;;  %s321_s0 = inlined_call_operand.hbm [shape: f32[16,256], index: 0, kind: input, shape index: {}]   ;;  %s322_s1 = inlined_call_operand.hbm [shape: f32[1,256], index: 1, kind: input, shape index: {}]   ;;  %s323_s2 = inlined_call_operand.hbm [shape: f32[1,256], index: 2, kind: input, shape index: {}]   ;;  %s324_s3 = inlined_call_operand.hbm [shape: bf16[16,256], index: 3, kind: output, shape index: {}]  }
   0x1   :  { %9 = vsyncpa [#allocation6], 0  ;;  %s29_s14 = sshll.u32 %s322_s1, 4  ;;  %s30_s14 = int_to_ptr.hbm [resolvable:$true] %s29_s14 }
   0x2   :  { %10 = vsyncpa [#allocation4], 0  ;;  %s280_s15 = smov [#allocation5]   ;;  %s15_s19 = sshll.u32 %s321_s0, 4  ;;  %s16_s19 = int_to_ptr.hbm [resolvable:$true] %s15_s19 }
   0x3   :  { %s31_s16 = sshll.u32 %s280_s15, 4  ;;  %s281_s20 = smov [#allocation2]   ;;  %s32_s16 = int_to_ptr.vmem [resolvable:$true] %s31_s16 }
   0x4   :  { %34 = dma.hbm_to_vmem [thread:$0]  %s30_s14, 32, %s32_s16, [#allocation6]  }
   0x5   :  { %s17_s21 = sshll.u32 %s281_s20, 4  ;;  %s282_s22 = smov 256   ;;  %s18_s21 = int_to_ptr.vmem [resolvable:$true] %s17_s21 }
   0x6   :  { %s283_s23 = smov 16   ;;  %s40_s1 = sshll.u32 %s323_s2, 4  ;;  %s41_s1 = int_to_ptr.hbm [resolvable:$true] %s40_s1 }
   0x7   :  { %23 = dma.hbm_to_vmem [thread:$0]  %s16_s19, 512, %s18_s21, [#allocation3], %s282_s22, %s282_s22, %s283_s23  }
   0x8   :  { %s284_s26 = smov [#allocation7]  }
   0x9   :  { %s42_s27 = sshll.u32 %s284_s26, 4  ;;  %s43_s27 = int_to_ptr.vmem [resolvable:$true] %s42_s27 }
   0xa   :  { %45 = dma.hbm_to_vmem [thread:$0]  %s41_s1, 32, %s43_s27, [#allocation6]  }
   0xb   :  { %274 = dma.done.wait [#allocation3], 512  }
   0xc   :  { %275 = vsyncadd [#allocation3], 4294966784 }
   0xd   :  { %276 = dma.done.wait [#allocation6], 64  }
   0xe   :  { %277 = vsyncadd [#allocation6], 4294967232  ;;  %v58_v0 = vld [vmem:[#allocation2] sm:$0xff]  ;;  %v59_v1 = vld [vmem:[#allocation2 + $0x8] sm:$0xff]  ;;  %v285_v6 = vmov 256.0   ;;  %s286_s0 = smov [#allocation8]  }
   0xf   :  { %v62_v2 = vadd.f32 %v59_v1, %v58_v0  ;;  %v60_v3 = vld [vmem:[#allocation2 + $0x10] sm:$0xff]  ;;  %v61_v4 = vld [vmem:[#allocation2 + $0x18] sm:$0xff]  ;;  %172 = vrcp.f32 %v285_v6  ;;  %v119_v37 = vld [vmem:[#allocation5] sm:$0x3]  ;;  %s147_s2 = sshll.u32 %s286_s0, 4  ;;  %s149_s30 = sshll.u32 %s324_s3, 4  ;;  %s148_s2 = int_to_ptr.vmem [resolvable:$true] %s147_s2  ;;  %s150_s30 = int_to_ptr.hbm [resolvable:$true] %s149_s30 }
  0x10   :  { %v65_v5 = vadd.f32 %v61_v4, %v60_v3  ;;  %v129_v40 = vld [vmem:[#allocation7] sm:$0x3]  ;;  %v121_v43 = vperm.slane %v119_v37, 0  ;;  %v122_v44 = vperm.slane %v119_v37, 1  ;;  %s287_s4 = smov 128   ;;  %s288_s5 = smov 8  }
  0x11   :  { %63 = vadd.xlane.f32.xlu0 %v62_v2  ;;  %v131_v47 = vperm.slane %v129_v40, 0  ;;  %v132_v48 = vperm.slane %v129_v40, 1 }
  0x15   :  { %v173_v7 = vpop.eup %172 }
  0x16   :  { %v69_v8 = vmul.f32 256.0, %v173_v7  ;;  %vm73_vm0 = vweird.f32 %v173_v7 }
  0x18   :  { %v70_v9 = vsub.f32 1.0, %v69_v8 }
  0x19   :  { %66 = vadd.xlane.f32.xlu0 %v65_v5 }
  0x1a   :  { %v71_v10 = vmul.f32 %v173_v7, %v70_v9 }
  0x1c   :  { %v72_v11 = vadd.f32 %v173_v7, %v71_v10 }
  0x1e   :  { %v74_v12 = vsel %vm73_vm0, %v173_v7, %v72_v11 }
  0x84   :  { %v64_v13 = vpop.xlane.xlu0 %63 }
  0x85   :  { %v75_v14 = vmul.f32 %v74_v12, %v64_v13 }
  0x87   :  { %v77_v15 = vsub.f32 %v58_v0, %v75_v14  ;;  %v78_v16 = vsub.f32 %v59_v1, %v75_v14 }
  0x89   :  { %v81_v17 = vmul.f32 %v77_v15, %v77_v15  ;;  %v82_v18 = vmul.f32 %v78_v16, %v78_v16 }
  0x8b   :  { %v85_v19 = vadd.f32 %v82_v18, %v81_v17 }
  0x8c   :  { %v67_v20 = vpop.xlane.xlu0 %66 }
  0x8d   :  { %v76_v21 = vmul.f32 %v74_v12, %v67_v20  ;;  %86 = vadd.xlane.f32.xlu1 %v85_v19 }
  0x8f   :  { %v79_v22 = vsub.f32 %v60_v3, %v76_v21  ;;  %v80_v23 = vsub.f32 %v61_v4, %v76_v21 }
  0x91   :  { %v83_v24 = vmul.f32 %v79_v22, %v79_v22  ;;  %v84_v25 = vmul.f32 %v80_v23, %v80_v23 }
  0x93   :  { %v88_v26 = vadd.f32 %v84_v25, %v83_v24 }
  0x95   :  { %89 = vadd.xlane.f32.xlu1 %v88_v26 }
 0x100   :  { %v87_v27 = vpop.xlane.xlu1 %86 }
 0x101   :  { %v91_v28 = vmul.f32 %v87_v27, %v74_v12 }
 0x103   :  { %v93_v29 = vadd.f32 1e-05, %v91_v28 }
 0x105   :  { %174 = vrsqrt.f32 %v93_v29  ;;  %vm101_vm2 = vweird.f32 %v93_v29 }
 0x108   :  { %v90_v30 = vpop.xlane.xlu1 %89 }
 0x109   :  { %v92_v31 = vmul.f32 %v90_v30, %v74_v12 }
 0x10b   :  { %v175_v32 = vpop.eup %174  ;;  %v94_v33 = vadd.f32 1e-05, %v92_v31 }
 0x10c   :  { %v96_v34 = vmul.f32 %v175_v32, %v93_v29  ;;  %vm102_vm1 = vweird.f32 %v175_v32 }
 0x10d   :  { %176 = vrsqrt.f32 %v94_v33  ;;  %vm103_vm3 = vmor %vm101_vm2, %vm102_vm1  ;;  %vm111_vm5 = vweird.f32 %v94_v33 }
 0x10e   :  { %v97_v35 = vmul.f32 %v175_v32, %v96_v34 }
 0x110   :  { %v98_v36 = vmul.f32 0.5, %v97_v35 }
 0x112   :  { %v99_v38 = vsub.f32 1.5, %v98_v36 }
 0x113   :  { %v177_v39 = vpop.eup %176 }
 0x114   :  { %v100_v41 = vmul.f32 %v175_v32, %v99_v38  ;;  %v106_v42 = vmul.f32 %v177_v39, %v94_v33  ;;  %vm112_vm4 = vweird.f32 %v177_v39 }
 0x115   :  { %vm113_vm6 = vmor %vm111_vm5, %vm112_vm4 }
 0x116   :  { %v104_v45 = vsel %vm103_vm3, %v175_v32, %v100_v41  ;;  %v107_v46 = vmul.f32 %v177_v39, %v106_v42 }
 0x117   :  { %v115_v49 = vmul.f32 %v104_v45, %v77_v15  ;;  %v116_v50 = vmul.f32 %v104_v45, %v78_v16 }
 0x118   :  { %v108_v51 = vmul.f32 0.5, %v107_v46 }
 0x119   :  { %v125_v52 = vmul.f32 %v121_v43, %v115_v49  ;;  %v126_v53 = vmul.f32 %v122_v44, %v116_v50 }
 0x11a   :  { %v109_v54 = vsub.f32 1.5, %v108_v51 }
 0x11b   :  { %v135_v55 = vadd.f32 %v131_v47, %v125_v52  ;;  %v136_v56 = vadd.f32 %v132_v48, %v126_v53 }
 0x11c   :  { %v110_v57 = vmul.f32 %v177_v39, %v109_v54 }
 0x11d   :  { %v139_v58 = vpack.c.bf16 %v136_v56, %v135_v55 }
 0x11e   :  { %v114_v59 = vsel %vm113_vm6, %v177_v39, %v110_v57 }
 0x11f   :  { %v117_v60 = vmul.f32 %v114_v59, %v79_v22  ;;  %v118_v61 = vmul.f32 %v114_v59, %v80_v23  ;;  %141 = vst [vmem:[#allocation8] sm:$0xff] %v139_v58 }
 0x121   :  { %v127_v62 = vmul.f32 %v121_v43, %v117_v60  ;;  %v128_v63 = vmul.f32 %v122_v44, %v118_v61 }
 0x123   :  { %v137_v0 = vadd.f32 %v131_v47, %v127_v62  ;;  %v138_v1 = vadd.f32 %v132_v48, %v128_v63 }
 0x125   :  { %v140_v2 = vpack.c.bf16 %v138_v1, %v137_v0 }
 0x127   :  { %142 = vst [vmem:[#allocation8 + $0x8] sm:$0xff] %v140_v2 }
 0x128   :  { %155 = dma.vmem_to_hbm [thread:$0]  %s148_s2, 256, %s150_s30, [#allocation4], %s287_s4, %s287_s4, %s288_s5  }
 0x129   :  { %278 = dma.done.wait [#allocation4], 256  }
 0x12a   :  { %279 = vsyncadd [#allocation4], 4294967040 }
 0x12b   :  { %160 = vsyncpa [#allocation3], 1 }
 0x12c   :  { %161 = vsyncpa [#allocation6], 1 }
 0x12d   :  { %162 = vsyncpa [#allocation4], 1 }

</bundles_post_ra>
